<compile_context>
chip_gen: v6e
topology: v6e:2x2x1
jax: 0.10.0
libtpu: 0.0.40
codegen_flags: <defaults>
</compile_context>

<pallas_src>
import functools

import jax
import jax.numpy as jnp
from jax.experimental import pallas as pl
from jax.experimental.pallas import tpu as pltpu


def _layer_norm(v, w, b, eps=1e-5):
    """LayerNorm over the last axis in f32 (w, b broadcast over rows)."""
    mu = jnp.mean(v, axis=-1, keepdims=True)
    c = v - mu
    var = jnp.mean(c * c, axis=-1, keepdims=True)
    return c * jax.lax.rsqrt(var + eps) * w + b


def transformer_layer_kernel(x_ref, ln1w_ref, ln1b_ref,
                             wqkv_ref, wout_ref, bout_ref,
                             ln2w_ref, ln2b_ref,
                             w1_ref, b1_ref, w2_ref, b2_ref,
                             o_ref, x_state,
                             *, bt, n, heads, dim_head, approx_recip):
    layer = pl.program_id(1)
    num_layers = pl.num_programs(1)

    # Load the residual stream into the f32 VMEM scratch at the first layer.
    @pl.when(layer == 0)
    def _():
        x_state[...] = x_ref[...].astype(jnp.float32)

    x = x_state[...]                       # (bt*n, dim) f32 residual stream
    rows, dim = x.shape
    inner = heads * dim_head
    cd = wqkv_ref.dtype                    # MXU operand (compute) dtype

    # ---------------- PreNorm + Attention ----------------
    xn = _layer_norm(x, ln1w_ref[...], ln1b_ref[...])               # (rows, dim)

    # One fused QKV matmul (near-full MXU width N = 3*inner); the
    # 1/sqrt(dim_head) scale was folded into the Q columns at prep time.
    qkv = jnp.dot(xn.astype(cd), wqkv_ref[...], preferred_element_type=cd)

    def split_heads(t):                    # (rows, inner) -> (bt*heads, n, dim_head)
        return (t.reshape(bt, n, heads, dim_head)
                 .transpose(0, 2, 1, 3)
                 .reshape(bt * heads, n, dim_head))

    q = split_heads(qkv[:, 0 * inner:1 * inner])
    k = split_heads(qkv[:, 1 * inner:2 * inner])
    v = split_heads(qkv[:, 2 * inner:3 * inner])

    # Scores (batched over bt*heads), softmax in f32.
    s = jnp.einsum('bie,bje->bij', q, k, preferred_element_type=jnp.float32)
    s = s - jnp.max(s, axis=-1, keepdims=True)
    e = jnp.exp(s)
    p = e * pl.reciprocal(jnp.sum(e, axis=-1, keepdims=True), approx=approx_recip)

    o = jnp.einsum('bij,bje->bie', p.astype(cd), v,
                   preferred_element_type=jnp.float32)   # (bt*heads, n, dim_head)

    # 'b h n d -> (b n) (h d)', then one fused output projection: the head
    # reduction happens inside the MXU accumulator.
    o = (o.reshape(bt, heads, n, dim_head)
          .transpose(0, 2, 1, 3)
          .reshape(rows, inner))
    attn_out = jnp.dot(o.astype(cd), wout_ref[...],
                       preferred_element_type=jnp.float32) + bout_ref[...]
    x = x + attn_out

    # ---------------- PreNorm + FeedForward ----------------
    xn2 = _layer_norm(x, ln2w_ref[...], ln2b_ref[...])
    h = jnp.dot(xn2.astype(cd), w1_ref[...],
                preferred_element_type=jnp.float32) + b1_ref[...]
    # TODO(synk): PyTorch nn.GELU() uses the exact erf form; tanh approximation
    # used here (and in the JAX reference), max abs deviation ~3e-3.
    h = jax.nn.gelu(h, approximate=True)
    ffn = jnp.dot(h.astype(cd), w2_ref[...],
                  preferred_element_type=jnp.float32) + b2_ref[...]
    x = x + ffn

    x_state[...] = x

    @pl.when(layer == num_layers - 1)
    def _():
        o_ref[...] = x.astype(o_ref.dtype)


def _vmem_limit_bytes():
    """Generation-aware VMEM limit (~48 MiB usable on v7x, ~96 MiB on v5e/v6e)."""
    cap = None
    try:
        info = pltpu.get_tpu_info()
        cap = getattr(info, 'vmem_capacity_bytes', None)
    except Exception:
        cap = None
    if not cap:
        cap = 64 * 1024 * 1024            # conservative default (v7x per-TC)
    return int(max(32 * 1024 * 1024, min(cap * 3 // 4, 100 * 1024 * 1024)))


def _auto_batch_block(b, n, dim, inner, hidden, heads, cd_itemsize, vmem_limit):
    """Largest batch block that fits the VMEM budget, keeping the parallel
    batch axis >= 2 when possible (v7x runs 2 TensorCores)."""
    layer_w = cd_itemsize * (dim * 3 * inner + inner * dim
                             + dim * hidden + hidden * dim)
    fixed = 2 * layer_w + 256 * 1024          # double-buffered weights + params
    budget = max(vmem_limit - fixed, vmem_limit // 8)

    def act_bytes(bt):
        rows = bt * n
        work = 4 * rows * (3 * dim + 4 * inner + hidden)   # f32 working tensors
        work += 4 * bt * heads * n * n                     # attention scores
        work += 4 * rows * dim                             # residual-carry scratch
        work += 2 * 2 * rows * dim * 4                     # double-buffered x in/out
        return work

    divisors = [d for d in range(1, b + 1) if b % d == 0]
    # (bt*n) must be sublane-tileable (multiple of 8) unless it is the full array.
    valid = [d for d in divisors if (d * n) % 8 == 0 or d == b]
    fitting = [d for d in valid if act_bytes(d) <= budget] or [min(valid)]
    bt = max(fitting)
    if b // bt < 2:
        halves = [d for d in fitting if b // d >= 2]
        if halves:
            bt = max(halves)
    return bt


def transformer_pallas(x, params, *, heads, dim_head,
                       compute_dtype=jnp.bfloat16, batch_block=None):
    """Full Transformer stack. `params` is a dict of arrays stacked over depth."""
    b, n, dim = x.shape
    inner = heads * dim_head
    depth = params['wqkv'].shape[0]
    hidden = params['w1'].shape[-1]
    scale = dim_head ** (-0.5)
    f32 = jnp.float32
    cd = jnp.dtype(compute_dtype)

    # ---- parameter prep (outside the kernel: pure layout plumbing) ----
    wqkv = params['wqkv'].astype(f32)
    wqkv = wqkv.at[:, :, :inner].multiply(scale)     # fold 1/sqrt(dim_head) into Q
    wqkv = wqkv.astype(cd)                           # (depth, dim, 3*inner)
    wout = params['wout'].astype(cd)                 # (depth, inner, dim)
    w1 = params['w1'].astype(cd)                     # (depth, dim, hidden)
    w2 = params['w2'].astype(cd)                     # (depth, hidden, dim)

    ln1_w = params['ln1_w'].reshape(depth, 1, dim).astype(f32)
    ln1_b = params['ln1_b'].reshape(depth, 1, dim).astype(f32)
    ln2_w = params['ln2_w'].reshape(depth, 1, dim).astype(f32)
    ln2_b = params['ln2_b'].reshape(depth, 1, dim).astype(f32)
    bout = params['bout'].reshape(depth, 1, dim).astype(f32)
    b1 = params['b1'].reshape(depth, 1, hidden).astype(f32)
    b2 = params['b2'].reshape(depth, 1, dim).astype(f32)

    vmem_limit = _vmem_limit_bytes()
    bt = batch_block if batch_block is not None else _auto_batch_block(
        b, n, dim, inner, hidden, heads, cd.itemsize, vmem_limit)
    assert b % bt == 0, f"batch block {bt} must divide batch {b}"

    sq = pl.Squeezed()

    def per_layer(*tail):
        return pl.BlockSpec((sq, *tail), lambda i, j, _n=len(tail): (j,) + (0,) * _n)

    in_specs = [
        pl.BlockSpec((bt * n, dim), lambda i, j: (i, 0)),   # x (bt batch elems, flat tokens)
        per_layer(1, dim), per_layer(1, dim),               # ln1 w, b
        per_layer(dim, 3 * inner),                          # wqkv (Q-scale folded in)
        per_layer(inner, dim),                              # wout
        per_layer(1, dim),                                  # bout
        per_layer(1, dim), per_layer(1, dim),               # ln2 w, b
        per_layer(dim, hidden), per_layer(1, hidden),       # w1, b1
        per_layer(hidden, dim), per_layer(1, dim),          # w2, b2
    ]
    out_specs = pl.BlockSpec((bt * n, dim), lambda i, j: (i, 0))

    flops_layer = (2 * n * dim * 3 * inner            # fused QKV projection
                   + 4 * heads * n * n * dim_head     # scores + PV
                   + 2 * n * inner * dim              # output projection
                   + 4 * n * dim * hidden)            # MLP up + down
    weight_bytes = sum(int(a.size) * a.dtype.itemsize
                       for a in (wqkv, wout, w1, w2, ln1_w, ln1_b,
                                 ln2_w, ln2_b, bout, b1, b2))
    cost = pl.CostEstimate(
        flops=int(b * depth * flops_layer),
        transcendentals=int(b * depth * (heads * n * n + heads * n
                                         + n * hidden + 2 * n)),
        # Weights are re-read once per batch BLOCK, not per batch element.
        bytes_accessed=int(2 * x.size * x.dtype.itemsize + (b // bt) * weight_bytes),
    )

    kernel = functools.partial(transformer_layer_kernel,
                               bt=bt, n=n, heads=heads, dim_head=dim_head,
                               approx_recip=(cd != jnp.float32))

    x_flat = x.reshape(b * n, dim)
    y_flat = pl.pallas_call(
        kernel,
        out_shape=jax.ShapeDtypeStruct((b * n, dim), x.dtype),
        grid_spec=pltpu.PrefetchScalarGridSpec(
            num_scalar_prefetch=0,
            grid=(b // bt, depth),              # (parallel batch blocks, sequential layers)
            in_specs=in_specs,
            out_specs=out_specs,
            scratch_shapes=[pltpu.VMEM((bt * n, dim), jnp.float32)],  # residual carry
        ),
        compiler_params=pltpu.CompilerParams(
            dimension_semantics=("parallel", "arbitrary"),
            vmem_limit_bytes=vmem_limit,
        ),
        cost_estimate=cost,
    )(x_flat, ln1_w, ln1_b, wqkv, wout, bout, ln2_w, ln2_b, w1, b1, w2, b2)
    return y_flat.reshape(b, n, dim)


def transformer_reference(x, params, *, heads, dim_head):
    """Pure-JAX (f32) replica of the PyTorch Transformer.forward
    (dropout=0, stochastic_depth=0, is_LSA=False)."""
    b, n, dim = x.shape
    inner = heads * dim_head
    scale = dim_head ** (-0.5)
    depth = params['wqkv'].shape[0]

    def layer_norm(v, w, bb):
        mu = jnp.mean(v, axis=-1, keepdims=True)
        var = jnp.mean((v - mu) ** 2, axis=-1, keepdims=True)
        return (v - mu) / jnp.sqrt(var + 1e-5) * w + bb

    for l in range(depth):
        # PreNorm + Attention + residual
        xn = layer_norm(x, params['ln1_w'][l], params['ln1_b'][l])
        qkv = xn @ params['wqkv'][l]
        q, k, v = jnp.split(qkv, 3, axis=-1)
        to_heads = lambda t: t.reshape(b, n, heads, dim_head).transpose(0, 2, 1, 3)
        q, k, v = map(to_heads, (q, k, v))
        dots = jnp.einsum('bhid,bhjd->bhij', q, k) * scale
        attn = jax.nn.softmax(dots, axis=-1)
        out = jnp.einsum('bhij,bhjd->bhid', attn, v)
        out = out.transpose(0, 2, 1, 3).reshape(b, n, inner)
        x = x + (out @ params['wout'][l] + params['bout'][l])
        # PreNorm + FeedForward + residual
        xn2 = layer_norm(x, params['ln2_w'][l], params['ln2_b'][l])
        h = jax.nn.gelu(xn2 @ params['w1'][l] + params['b1'][l], approximate=True)
        x = x + (h @ params['w2'][l] + params['b2'][l])
    return x


if __name__ == "__main__":
    # Small shapes consistent with the module: depth=2 layers, batch=2,
    # n=8 tokens, dim=32, heads=4, dim_head=8 (inner=32), mlp_dim_ratio=4
    # (hidden=128); dropout=0, stochastic_depth=0, is_LSA=False.
    b, n, dim = 2, 8, 32
    heads, dim_head = 4, 8
    depth, mlp_dim_ratio = 2, 4
    inner = heads * dim_head
    hidden = dim * mlp_dim_ratio

    key = jax.random.PRNGKey(0)
    kx, kqkv, kout, k1, k2 = jax.random.split(key, 5)

    x = jax.random.normal(kx, (b, n, dim), dtype=jnp.float32)

    # init_weights: xavier_normal_ on Linear weights, zero biases;
    # LayerNorm weight=1, bias=0.
    def xavier(k_, shape):
        fan_in, fan_out = shape[-2], shape[-1]
        std = (2.0 / (fan_in + fan_out)) ** 0.5
        return std * jax.random.normal(k_, shape, dtype=jnp.float32)

    params = dict(
        ln1_w=jnp.ones((depth, dim), jnp.float32),
        ln1_b=jnp.zeros((depth, dim), jnp.float32),
        wqkv=xavier(kqkv, (depth, dim, 3 * inner)),
        wout=xavier(kout, (depth, inner, dim)),
        bout=jnp.zeros((depth, dim), jnp.float32),
        ln2_w=jnp.ones((depth, dim), jnp.float32),
        ln2_b=jnp.zeros((depth, dim), jnp.float32),
        w1=xavier(k1, (depth, dim, hidden)),
        b1=jnp.zeros((depth, hidden), jnp.float32),
        w2=xavier(k2, (depth, hidden, dim)),
        b2=jnp.zeros((depth, dim), jnp.float32),
    )

    y_ref = transformer_reference(x, params, heads=heads, dim_head=dim_head)

    # Strict check: f32 compute path (exact reciprocal).
    y_f32 = transformer_pallas(x, params, heads=heads, dim_head=dim_head,
                               compute_dtype=jnp.float32)
    y_f32 = jax.block_until_ready(y_f32)
    assert y_f32.shape == (b, n, dim)
    assert jnp.allclose(y_f32, y_ref, atol=1e-3, rtol=1e-3), \
        "f32 kernel mismatch vs pure-JAX reference"

    # Default path: bf16 MXU operands (v6e/v7x-friendly), f32 accumulation.
    y_bf16 = transformer_pallas(x, params, heads=heads, dim_head=dim_head)
    y_bf16 = jax.block_until_ready(y_bf16)
    assert jnp.allclose(y_bf16, y_ref, atol=1e-1, rtol=1e-1), \
        "bf16 kernel mismatch vs pure-JAX reference"

    # TODO(synk): is_LSA=True branch (learnable per-head scale + diagonal
    # -987654321 mask) not implemented; default mask=None path only.
    print("KERNEL_OK")
</pallas_src>

<mosaic_0001>
module attributes {stable_mosaic.version = 11 : i64} {
  func.func @transformer_layer_kernel(%arg0: i32, %arg1: i32, %arg2: memref<8x32xf32, #tpu.memory_space<vmem>>, %arg3: memref<1x1x32xf32, #tpu.memory_space<vmem>>, %arg4: memref<1x1x32xf32, #tpu.memory_space<vmem>>, %arg5: memref<1x32x96xf32, #tpu.memory_space<vmem>>, %arg6: memref<1x32x32xf32, #tpu.memory_space<vmem>>, %arg7: memref<1x1x32xf32, #tpu.memory_space<vmem>>, %arg8: memref<1x1x32xf32, #tpu.memory_space<vmem>>, %arg9: memref<1x1x32xf32, #tpu.memory_space<vmem>>, %arg10: memref<1x32x128xf32, #tpu.memory_space<vmem>>, %arg11: memref<1x1x128xf32, #tpu.memory_space<vmem>>, %arg12: memref<1x128x32xf32, #tpu.memory_space<vmem>>, %arg13: memref<1x1x32xf32, #tpu.memory_space<vmem>>, %arg14: memref<8x32xf32, #tpu.memory_space<vmem>>, %arg15: memref<8x32xf32, #tpu.memory_space<vmem>>) attributes {dimension_semantics = [#tpu.dimension_semantics<parallel>, #tpu.dimension_semantics<arbitrary>], iteration_bounds = array<i64: 2, 2>, scalar_prefetch = 0 : i64, scratch_operands = 1 : i64, tpu.core_type = #tpu.core_type<tc>, window_params = [{transform_indices = @transform_0, window_bounds = array<i64: 8, 32>}, {transform_indices = @transform_1, window_bounds = array<i64: 1, 1, 32>}, {transform_indices = @transform_2, window_bounds = array<i64: 1, 1, 32>}, {transform_indices = @transform_3, window_bounds = array<i64: 1, 32, 96>}, {transform_indices = @transform_4, window_bounds = array<i64: 1, 32, 32>}, {transform_indices = @transform_5, window_bounds = array<i64: 1, 1, 32>}, {transform_indices = @transform_6, window_bounds = array<i64: 1, 1, 32>}, {transform_indices = @transform_7, window_bounds = array<i64: 1, 1, 32>}, {transform_indices = @transform_8, window_bounds = array<i64: 1, 32, 128>}, {transform_indices = @transform_9, window_bounds = array<i64: 1, 1, 128>}, {transform_indices = @transform_10, window_bounds = array<i64: 1, 128, 32>}, {transform_indices = @transform_11, window_bounds = array<i64: 1, 1, 32>}, {transform_indices = @transform_12, window_bounds = array<i64: 8, 32>}]} {
    %c0_i32 = arith.constant 0 : i32
    %0 = arith.cmpi eq, %arg1, %c0_i32 : i32
    %1 = arith.extui %0 : i1 to i32
    %c0_i32_0 = arith.constant 0 : i32
    %2 = arith.cmpi ne, %1, %c0_i32_0 : i32
    scf.if %2 {
      %c0_59 = arith.constant 0 : index
      %c0_60 = arith.constant 0 : index
      %122 = vector.load %arg2[%c0_59, %c0_60] : memref<8x32xf32, #tpu.memory_space<vmem>>, vector<8x32xf32>
      %c0_61 = arith.constant 0 : index
      %c0_62 = arith.constant 0 : index
      %123 = vector.load %arg15[%c0_61, %c0_62] : memref<8x32xf32, #tpu.memory_space<vmem>>, vector<8x32xf32>
      tpu.vector_store %arg15[%c0_61, %c0_62], %122 {strides = array<i32>} : memref<8x32xf32, #tpu.memory_space<vmem>>, vector<8x32xf32>,
    } else {
    }
    %c0 = arith.constant 0 : index
    %c0_1 = arith.constant 0 : index
    %3 = vector.load %arg15[%c0, %c0_1] : memref<8x32xf32, #tpu.memory_space<vmem>>, vector<8x32xf32>
    %c0_2 = arith.constant 0 : index
    %c0_3 = arith.constant 0 : index
    %c0_4 = arith.constant 0 : index
    %4 = vector.load %arg3[%c0_2, %c0_3, %c0_4] : memref<1x1x32xf32, #tpu.memory_space<vmem>>, vector<1x1x32xf32>
    %5 = vector.shape_cast %4 : vector<1x1x32xf32> to vector<1x32xf32>
    %c0_5 = arith.constant 0 : index
    %c0_6 = arith.constant 0 : index
    %c0_7 = arith.constant 0 : index
    %6 = vector.load %arg4[%c0_5, %c0_6, %c0_7] : memref<1x1x32xf32, #tpu.memory_space<vmem>>, vector<1x1x32xf32>
    %7 = vector.shape_cast %6 : vector<1x1x32xf32> to vector<1x32xf32>
    %cst = arith.constant dense<0.000000e+00> : vector<8xf32>
    %8 = vector.multi_reduction <add>, %3, %cst [1] : vector<8x32xf32> to vector<8xf32>
    %9 = vector.shape_cast %8 : vector<8xf32> to vector<8x1xf32>
    %cst_8 = arith.constant 3.200000e+01 : f32
    %10 = vector.broadcast %cst_8 : f32 to vector<8x1xf32>
    %11 = arith.divf %9, %10 : vector<8x1xf32>
    %12 = vector.broadcast %11 : vector<8x1xf32> to vector<8x32xf32>
    %13 = arith.subf %3, %12 : vector<8x32xf32>
    %14 = arith.mulf %13, %13 : vector<8x32xf32>
    %cst_9 = arith.constant dense<0.000000e+00> : vector<8xf32>
    %15 = vector.multi_reduction <add>, %14, %cst_9 [1] : vector<8x32xf32> to vector<8xf32>
    %16 = vector.shape_cast %15 : vector<8xf32> to vector<8x1xf32>
    %cst_10 = arith.constant 3.200000e+01 : f32
    %17 = vector.broadcast %cst_10 : f32 to vector<8x1xf32>
    %18 = arith.divf %16, %17 : vector<8x1xf32>
    %cst_11 = arith.constant 9.99999974E-6 : f32
    %19 = vector.broadcast %cst_11 : f32 to vector<8x1xf32>
    %20 = arith.addf %18, %19 : vector<8x1xf32>
    %21 = math.rsqrt %20 : vector<8x1xf32>
    %22 = vector.broadcast %21 : vector<8x1xf32> to vector<8x32xf32>
    %23 = arith.mulf %13, %22 : vector<8x32xf32>
    %24 = vector.broadcast %5 : vector<1x32xf32> to vector<8x32xf32>
    %25 = arith.mulf %23, %24 : vector<8x32xf32>
    %26 = vector.broadcast %7 : vector<1x32xf32> to vector<8x32xf32>
    %27 = arith.addf %25, %26 : vector<8x32xf32>
    %c0_12 = arith.constant 0 : index
    %c0_13 = arith.constant 0 : index
    %c0_14 = arith.constant 0 : index
    %28 = vector.load %arg5[%c0_12, %c0_13, %c0_14] : memref<1x32x96xf32, #tpu.memory_space<vmem>>, vector<1x32x96xf32>
    %29 = vector.shape_cast %28 : vector<1x32x96xf32> to vector<32x96xf32>
    %cst_15 = arith.constant dense<0.000000e+00> : vector<8x96xf32>
    %30 = tpu.matmul %27, %29, %cst_15 {dimension_numbers = #tpu.dot_dimension_numbers<[1], [0], [0], [1], [0, 0, 1, 1], [], []>} : vector<8x32xf32>, vector<32x96xf32>, vector<8x96xf32> -> vector<8x96xf32>
    %31 = vector.extract_strided_slice %30 {offsets = [0, 0], sizes = [8, 32], strides = [1, 1]} : vector<8x96xf32> to vector<8x32xf32>
    %32 = vector.shape_cast %31 : vector<8x32xf32> to vector<1x8x4x8xf32>
    %33 = tpu.transpose %32, [0, 2, 1, 3] : vector<1x8x4x8xf32> -> vector<1x4x8x8xf32>
    %34 = vector.shape_cast %33 : vector<1x4x8x8xf32> to vector<4x8x8xf32>
    %35 = vector.extract_strided_slice %30 {offsets = [0, 32], sizes = [8, 32], strides = [1, 1]} : vector<8x96xf32> to vector<8x32xf32>
    %36 = vector.shape_cast %35 : vector<8x32xf32> to vector<1x8x4x8xf32>
    %37 = tpu.transpose %36, [0, 2, 1, 3] : vector<1x8x4x8xf32> -> vector<1x4x8x8xf32>
    %38 = vector.shape_cast %37 : vector<1x4x8x8xf32> to vector<4x8x8xf32>
    %39 = vector.extract_strided_slice %30 {offsets = [0, 64], sizes = [8, 32], strides = [1, 1]} : vector<8x96xf32> to vector<8x32xf32>
    %40 = vector.shape_cast %39 : vector<8x32xf32> to vector<1x8x4x8xf32>
    %41 = tpu.transpose %40, [0, 2, 1, 3] : vector<1x8x4x8xf32> -> vector<1x4x8x8xf32>
    %42 = vector.shape_cast %41 : vector<1x4x8x8xf32> to vector<4x8x8xf32>
    "tpu.trace_start"() <{level = 10 : i32, message = "bie,bje->bij"}> : () -> ()
    %cst_16 = arith.constant dense<0.000000e+00> : vector<4x8x8xf32>
    %43 = tpu.matmul %34, %38, %cst_16 {dimension_numbers = #tpu.dot_dimension_numbers<[2], [2], [1], [1], [0, 0, 0, 1, 1, 1], [0], [0]>} : vector<4x8x8xf32>, vector<4x8x8xf32>, vector<4x8x8xf32> -> vector<4x8x8xf32>
    "tpu.trace_stop"() : () -> ()
    %cst_17 = arith.constant dense<0xFF800000> : vector<4x8xf32>
    %44 = vector.multi_reduction <maximumf>, %43, %cst_17 [2] : vector<4x8x8xf32> to vector<4x8xf32>
    %45 = vector.shape_cast %44 : vector<4x8xf32> to vector<4x8x1xf32>
    %46 = vector.broadcast %45 : vector<4x8x1xf32> to vector<4x8x8xf32>
    %47 = arith.subf %43, %46 : vector<4x8x8xf32>
    %48 = math.exp %47 : vector<4x8x8xf32>
    %cst_18 = arith.constant dense<0.000000e+00> : vector<4x8xf32>
    %49 = vector.multi_reduction <add>, %48, %cst_18 [2] : vector<4x8x8xf32> to vector<4x8xf32>
    %50 = vector.shape_cast %49 : vector<4x8xf32> to vector<4x8x1xf32>
    %51 = tpu.reciprocal %50 : vector<4x8x1xf32> -> vector<4x8x1xf32>
    %52 = vector.broadcast %51 : vector<4x8x1xf32> to vector<4x8x8xf32>
    %53 = arith.mulf %48, %52 : vector<4x8x8xf32>
    "tpu.trace_start"() <{level = 10 : i32, message = "bij,bje->bie"}> : () -> ()
    %cst_19 = arith.constant dense<0.000000e+00> : vector<4x8x8xf32>
    %54 = tpu.matmul %53, %42, %cst_19 {dimension_numbers = #tpu.dot_dimension_numbers<[2], [1], [1], [2], [0, 0, 0, 1, 1, 2], [0], [0]>} : vector<4x8x8xf32>, vector<4x8x8xf32>, vector<4x8x8xf32> -> vector<4x8x8xf32>
    "tpu.trace_stop"() : () -> ()
    %55 = vector.shape_cast %54 : vector<4x8x8xf32> to vector<1x4x8x8xf32>
    %56 = tpu.transpose %55, [0, 2, 1, 3] : vector<1x4x8x8xf32> -> vector<1x8x4x8xf32>
    %57 = vector.shape_cast %56 : vector<1x8x4x8xf32> to vector<8x32xf32>
    %c0_20 = arith.constant 0 : index
    %c0_21 = arith.constant 0 : index
    %c0_22 = arith.constant 0 : index
    %58 = vector.load %arg6[%c0_20, %c0_21, %c0_22] : memref<1x32x32xf32, #tpu.memory_space<vmem>>, vector<1x32x32xf32>
    %59 = vector.shape_cast %58 : vector<1x32x32xf32> to vector<32x32xf32>
    %cst_23 = arith.constant dense<0.000000e+00> : vector<8x32xf32>
    %60 = tpu.matmul %57, %59, %cst_23 {dimension_numbers = #tpu.dot_dimension_numbers<[1], [0], [0], [1], [0, 0, 1, 1], [], []>} : vector<8x32xf32>, vector<32x32xf32>, vector<8x32xf32> -> vector<8x32xf32>
    %c0_24 = arith.constant 0 : index
    %c0_25 = arith.constant 0 : index
    %c0_26 = arith.constant 0 : index
    %61 = vector.load %arg7[%c0_24, %c0_25, %c0_26] : memref<1x1x32xf32, #tpu.memory_space<vmem>>, vector<1x1x32xf32>
    %62 = vector.shape_cast %61 : vector<1x1x32xf32> to vector<1x32xf32>
    %63 = vector.broadcast %62 : vector<1x32xf32> to vector<8x32xf32>
    %64 = arith.addf %60, %63 : vector<8x32xf32>
    %65 = arith.addf %3, %64 : vector<8x32xf32>
    %c0_27 = arith.constant 0 : index
    %c0_28 = arith.constant 0 : index
    %c0_29 = arith.constant 0 : index
    %66 = vector.load %arg8[%c0_27, %c0_28, %c0_29] : memref<1x1x32xf32, #tpu.memory_space<vmem>>, vector<1x1x32xf32>
    %67 = vector.shape_cast %66 : vector<1x1x32xf32> to vector<1x32xf32>
    %c0_30 = arith.constant 0 : index
    %c0_31 = arith.constant 0 : index
    %c0_32 = arith.constant 0 : index
    %68 = vector.load %arg9[%c0_30, %c0_31, %c0_32] : memref<1x1x32xf32, #tpu.memory_space<vmem>>, vector<1x1x32xf32>
    %69 = vector.shape_cast %68 : vector<1x1x32xf32> to vector<1x32xf32>
    %cst_33 = arith.constant dense<0.000000e+00> : vector<8xf32>
    %70 = vector.multi_reduction <add>, %65, %cst_33 [1] : vector<8x32xf32> to vector<8xf32>
    %71 = vector.shape_cast %70 : vector<8xf32> to vector<8x1xf32>
    %cst_34 = arith.constant 3.200000e+01 : f32
    %72 = vector.broadcast %cst_34 : f32 to vector<8x1xf32>
    %73 = arith.divf %71, %72 : vector<8x1xf32>
    %74 = vector.broadcast %73 : vector<8x1xf32> to vector<8x32xf32>
    %75 = arith.subf %65, %74 : vector<8x32xf32>
    %76 = arith.mulf %75, %75 : vector<8x32xf32>
    %cst_35 = arith.constant dense<0.000000e+00> : vector<8xf32>
    %77 = vector.multi_reduction <add>, %76, %cst_35 [1] : vector<8x32xf32> to vector<8xf32>
    %78 = vector.shape_cast %77 : vector<8xf32> to vector<8x1xf32>
    %cst_36 = arith.constant 3.200000e+01 : f32
    %79 = vector.broadcast %cst_36 : f32 to vector<8x1xf32>
    %80 = arith.divf %78, %79 : vector<8x1xf32>
    %cst_37 = arith.constant 9.99999974E-6 : f32
    %81 = vector.broadcast %cst_37 : f32 to vector<8x1xf32>
    %82 = arith.addf %80, %81 : vector<8x1xf32>
    %83 = math.rsqrt %82 : vector<8x1xf32>
    %84 = vector.broadcast %83 : vector<8x1xf32> to vector<8x32xf32>
    %85 = arith.mulf %75, %84 : vector<8x32xf32>
    %86 = vector.broadcast %67 : vector<1x32xf32> to vector<8x32xf32>
    %87 = arith.mulf %85, %86 : vector<8x32xf32>
    %88 = vector.broadcast %69 : vector<1x32xf32> to vector<8x32xf32>
    %89 = arith.addf %87, %88 : vector<8x32xf32>
    %c0_38 = arith.constant 0 : index
    %c0_39 = arith.constant 0 : index
    %c0_40 = arith.constant 0 : index
    %90 = vector.load %arg10[%c0_38, %c0_39, %c0_40] : memref<1x32x128xf32, #tpu.memory_space<vmem>>, vector<1x32x128xf32>
    %91 = vector.shape_cast %90 : vector<1x32x128xf32> to vector<32x128xf32>
    %cst_41 = arith.constant dense<0.000000e+00> : vector<8x128xf32>
    %92 = tpu.matmul %89, %91, %cst_41 {dimension_numbers = #tpu.dot_dimension_numbers<[1], [0], [0], [1], [0, 0, 1, 1], [], []>} : vector<8x32xf32>, vector<32x128xf32>, vector<8x128xf32> -> vector<8x128xf32>
    %c0_42 = arith.constant 0 : index
    %c0_43 = arith.constant 0 : index
    %c0_44 = arith.constant 0 : index
    %93 = vector.load %arg11[%c0_42, %c0_43, %c0_44] : memref<1x1x128xf32, #tpu.memory_space<vmem>>, vector<1x1x128xf32>
    %94 = vector.shape_cast %93 : vector<1x1x128xf32> to vector<1x128xf32>
    %95 = vector.broadcast %94 : vector<1x128xf32> to vector<8x128xf32>
    %96 = arith.addf %92, %95 : vector<8x128xf32>
    %97 = arith.mulf %96, %96 : vector<8x128xf32>
    %98 = arith.mulf %96, %97 : vector<8x128xf32>
    %cst_45 = arith.constant 4.471500e-02 : f32
    %99 = vector.broadcast %cst_45 : f32 to vector<8x128xf32>
    %100 = arith.mulf %99, %98 : vector<8x128xf32>
    %101 = arith.addf %96, %100 : vector<8x128xf32>
    %cst_46 = arith.constant 0.797884583 : f32
    %102 = vector.broadcast %cst_46 : f32 to vector<8x128xf32>
    %103 = arith.mulf %102, %101 : vector<8x128xf32>
    %104 = math.tanh %103 : vector<8x128xf32>
    %cst_47 = arith.constant 1.000000e+00 : f32
    %105 = vector.broadcast %cst_47 : f32 to vector<8x128xf32>
    %106 = arith.addf %105, %104 : vector<8x128xf32>
    %cst_48 = arith.constant 5.000000e-01 : f32
    %107 = vector.broadcast %cst_48 : f32 to vector<8x128xf32>
    %108 = arith.mulf %107, %106 : vector<8x128xf32>
    %109 = arith.mulf %96, %108 : vector<8x128xf32>
    %c0_49 = arith.constant 0 : index
    %c0_50 = arith.constant 0 : index
    %c0_51 = arith.constant 0 : index
    %110 = vector.load %arg12[%c0_49, %c0_50, %c0_51] : memref<1x128x32xf32, #tpu.memory_space<vmem>>, vector<1x128x32xf32>
    %111 = vector.shape_cast %110 : vector<1x128x32xf32> to vector<128x32xf32>
    %cst_52 = arith.constant dense<0.000000e+00> : vector<8x32xf32>
    %112 = tpu.matmul %109, %111, %cst_52 {dimension_numbers = #tpu.dot_dimension_numbers<[1], [0], [0], [1], [0, 0, 1, 1], [], []>} : vector<8x128xf32>, vector<128x32xf32>, vector<8x32xf32> -> vector<8x32xf32>
    %c0_53 = arith.constant 0 : index
    %c0_54 = arith.constant 0 : index
    %c0_55 = arith.constant 0 : index
    %113 = vector.load %arg13[%c0_53, %c0_54, %c0_55] : memref<1x1x32xf32, #tpu.memory_space<vmem>>, vector<1x1x32xf32>
    %114 = vector.shape_cast %113 : vector<1x1x32xf32> to vector<1x32xf32>
    %115 = vector.broadcast %114 : vector<1x32xf32> to vector<8x32xf32>
    %116 = arith.addf %112, %115 : vector<8x32xf32>
    %117 = arith.addf %65, %116 : vector<8x32xf32>
    %c0_56 = arith.constant 0 : index
    %c0_57 = arith.constant 0 : index
    %118 = vector.load %arg15[%c0_56, %c0_57] : memref<8x32xf32, #tpu.memory_space<vmem>>, vector<8x32xf32>
    tpu.vector_store %arg15[%c0_56, %c0_57], %117 {strides = array<i32>} : memref<8x32xf32, #tpu.memory_space<vmem>>, vector<8x32xf32>,
    %c1_i32 = arith.constant 1 : i32
    %119 = arith.cmpi eq, %arg1, %c1_i32 : i32
    %120 = arith.extui %119 : i1 to i32
    %c0_i32_58 = arith.constant 0 : i32
    %121 = arith.cmpi ne, %120, %c0_i32_58 : i32
    scf.if %121 {
      %c0_59 = arith.constant 0 : index
      %c0_60 = arith.constant 0 : index
      %122 = vector.load %arg14[%c0_59, %c0_60] : memref<8x32xf32, #tpu.memory_space<vmem>>, vector<8x32xf32>
      tpu.vector_store %arg14[%c0_59, %c0_60], %117 {strides = array<i32>} : memref<8x32xf32, #tpu.memory_space<vmem>>, vector<8x32xf32>,
    } else {
    }
    return
  }
  func.func @transform_0(%arg0: i32, %arg1: i32) -> (i32, i32) {
    %c0_i32 = arith.constant 0 : i32
    %c0_i32_0 = arith.constant 0 : i32
    return %arg0, %c0_i32 : i32, i32
  }
  func.func @transform_1(%arg0: i32, %arg1: i32) -> (i32, i32, i32) {
    %c0_i32 = arith.constant 0 : i32
    %c0_i32_0 = arith.constant 0 : i32
    %c0_i32_1 = arith.constant 0 : i32
    return %arg1, %c0_i32, %c0_i32_0 : i32, i32, i32
  }
  func.func @transform_2(%arg0: i32, %arg1: i32) -> (i32, i32, i32) {
    %c0_i32 = arith.constant 0 : i32
    %c0_i32_0 = arith.constant 0 : i32
    %c0_i32_1 = arith.constant 0 : i32
    return %arg1, %c0_i32, %c0_i32_0 : i32, i32, i32
  }
  func.func @transform_3(%arg0: i32, %arg1: i32) -> (i32, i32, i32) {
    %c0_i32 = arith.constant 0 : i32
    %c0_i32_0 = arith.constant 0 : i32
    %c0_i32_1 = arith.constant 0 : i32
    return %arg1, %c0_i32, %c0_i32_0 : i32, i32, i32
  }
  func.func @transform_4(%arg0: i32, %arg1: i32) -> (i32, i32, i32) {
    %c0_i32 = arith.constant 0 : i32
    %c0_i32_0 = arith.constant 0 : i32
    %c0_i32_1 = arith.constant 0 : i32
    return %arg1, %c0_i32, %c0_i32_0 : i32, i32, i32
  }
  func.func @transform_5(%arg0: i32, %arg1: i32) -> (i32, i32, i32) {
    %c0_i32 = arith.constant 0 : i32
    %c0_i32_0 = arith.constant 0 : i32
    %c0_i32_1 = arith.constant 0 : i32
    return %arg1, %c0_i32, %c0_i32_0 : i32, i32, i32
  }
  func.func @transform_6(%arg0: i32, %arg1: i32) -> (i32, i32, i32) {
    %c0_i32 = arith.constant 0 : i32
    %c0_i32_0 = arith.constant 0 : i32
    %c0_i32_1 = arith.constant 0 : i32
    return %arg1, %c0_i32, %c0_i32_0 : i32, i32, i32
  }
  func.func @transform_7(%arg0: i32, %arg1: i32) -> (i32, i32, i32) {
    %c0_i32 = arith.constant 0 : i32
    %c0_i32_0 = arith.constant 0 : i32
    %c0_i32_1 = arith.constant 0 : i32
    return %arg1, %c0_i32, %c0_i32_0 : i32, i32, i32
  }
  func.func @transform_8(%arg0: i32, %arg1: i32) -> (i32, i32, i32) {
    %c0_i32 = arith.constant 0 : i32
    %c0_i32_0 = arith.constant 0 : i32
    %c0_i32_1 = arith.constant 0 : i32
    return %arg1, %c0_i32, %c0_i32_0 : i32, i32, i32
  }
  func.func @transform_9(%arg0: i32, %arg1: i32) -> (i32, i32, i32) {
    %c0_i32 = arith.constant 0 : i32
    %c0_i32_0 = arith.constant 0 : i32
    %c0_i32_1 = arith.constant 0 : i32
    return %arg1, %c0_i32, %c0_i32_0 : i32, i32, i32
  }
  func.func @transform_10(%arg0: i32, %arg1: i32) -> (i32, i32, i32) {
    %c0_i32 = arith.constant 0 : i32
    %c0_i32_0 = arith.constant 0 : i32
    %c0_i32_1 = arith.constant 0 : i32
    return %arg1, %c0_i32, %c0_i32_0 : i32, i32, i32
  }
  func.func @transform_11(%arg0: i32, %arg1: i32) -> (i32, i32, i32) {
    %c0_i32 = arith.constant 0 : i32
    %c0_i32_0 = arith.constant 0 : i32
    %c0_i32_1 = arith.constant 0 : i32
    return %arg1, %c0_i32, %c0_i32_0 : i32, i32, i32
  }
  func.func @transform_12(%arg0: i32, %arg1: i32) -> (i32, i32) {
    %c0_i32 = arith.constant 0 : i32
    %c0_i32_0 = arith.constant 0 : i32
    return %arg0, %c0_i32 : i32, i32
  }
}

</mosaic_0001>

<bundles_post_ra>
// kernel: tpu_custom_call.1
= control target key start
LH: loop header
LB: loop body
LE: loop exit
PB: predicated region body
PF: predicated region fallthrough
CT: control target
= control target key end

     0   :  { %s3401_s0 = inlined_call_operand.vmem [shape: f32[16,32], index: 0, kind: input, shape index: {}]   ;;  %s3402_s1 = inlined_call_operand.vmem [shape: f32[2,1,32], index: 1, kind: input, shape index: {}]   ;;  %s3403_s2 = inlined_call_operand.vmem [shape: f32[2,1,32], index: 2, kind: input, shape index: {}]   ;;  %s3404_s3 = inlined_call_operand.vmem [shape: f32[2,32,96], index: 3, kind: input, shape index: {}]   ;;  %s3405_s4 = inlined_call_operand.vmem [shape: f32[2,32,32], index: 4, kind: input, shape index: {}]   ;;  %s3406_s5 = inlined_call_operand.vmem [shape: f32[2,1,32], index: 5, kind: input, shape index: {}]   ;;  %s3407_s6 = inlined_call_operand.vmem [shape: f32[2,1,32], index: 6, kind: input, shape index: {}]   ;;  %s3408_s7 = inlined_call_operand.vmem [shape: f32[2,1,32], index: 7, kind: input, shape index: {}]   ;;  %s3409_s8 = inlined_call_operand.vmem [shape: f32[2,32,128], index: 8, kind: input, shape index: {}]   ;;  %s3410_s9 = inlined_call_operand.vmem [shape: f32[2,1,128], index: 9, kind: input, shape index: {}]   ;;  %s3411_s10 = inlined_call_operand.vmem [shape: f32[2,128,32], index: 10, kind: input, shape index: {}]   ;;  %s3412_s11 = inlined_call_operand.vmem [shape: f32[2,1,32], index: 11, kind: input, shape index: {}]   ;;  %s3413_s12 = inlined_call_operand.hbm [shape: f32[16,32], index: 12, kind: output, shape index: {}]  }
   0x1   :  { %3429 = sst [smem:[#allocation19_spill]] %s3401_s0 }
   0x2   :  { %3430 = sst [smem:[#allocation20_spill]] %s3404_s3 }
   0x3   :  { %3431 = sst [smem:[#allocation21_spill]] %s3405_s4 }
   0x4   :  { %3432 = sst [smem:[#allocation22_spill]] %s3413_s12 }
   0x5   :  { %17 = vsyncpa [#allocation4], 0 }
   0x6   :  { %19 = vsyncpa [#allocation4 + $0x1], 0  ;;  %s2941_s21 = smov 0   ;;  %s2943_s22 = smov 0  }
   0x7   :  { %s2945_s23 = smov 0   ;;  %s2947_s24 = smov 0  }
   0x8   :  { %s2949_s25 = smov 0   ;;  %s2951_s26 = smov 0  }
   0x9   :  { %s2953_s27 = smov 0   ;;  %s2955_s28 = smov 0  }
   0xa LB: > { %3433 = sst [smem:[#allocation6_spill]] %s2833_s21  ;;  %s2453_s29 = sadd.s32 4294967295, %s2861_s28   ;;  %s2861_s28 = sphi %s2955_s28, %s25_s28   ;;  %s2857_s27 = sphi %s2953_s27, %s3471_s27   ;;  %s2853_s26 = sphi %s2951_s26, %s3470_s26   ;;  %s2849_s25 = sphi %s2949_s25, %s3469_s25   ;;  %s2845_s24 = sphi %s2947_s24, %s3468_s24   ;;  %s2841_s23 = sphi %s2945_s23, %s3467_s23   ;;  %s2837_s22 = sphi %s2943_s22, %s3466_s22   ;;  %s2833_s21 = sphi %s2941_s21, %s3465_s21  }
   0xb   : > { %3434 = sst [smem:[#allocation7_spill]] %s2837_s22  ;;  %s2454_s30 = sadd.s32 4294967294, %s2861_s28  }
   0xc   : > { %3435 = sst [smem:[#allocation8_spill]] %s2841_s23  ;;  %s34_s13 = sadd.s32 1, %s2853_s26 }
   0xd   : > { %3436 = sst [smem:[#allocation9_spill]] %s2845_s24  ;;  %p35_p0 = scmp.ge.s32.totalorder %s34_s13, 2 }
   0xe   : > { %3437 = sst [smem:[#allocation10_spill]] %s2849_s25  ;;  %s37_s14 = sadd.s32 1, %s2857_s27 }
   0xf   : > { %3438 = sst [smem:[#allocation11_spill]] %s2853_s26  ;;  %p366_p1 = scmp.ne.s32.totalorder %s2841_s23, %s2837_s22 }
  0x10   : > { %3439 = sst [smem:[#allocation12_spill]] %s2857_s27  ;;  %p367_p2 = scmp.eq.s32.totalorder %s2453_s29, 3 }
  0x11   : > { %3440 = sst [smem:[#allocation13_spill]] %s2861_s28  ;;  %s3473_s13 = smov (%p35_p0, %s34_s13), 0 }
  0x12   : > { %3441 = sst [smem:[#allocation14_spill]] %s3473_s13  ;;  %s3475_s14 = smov (!%p35_p0, %s37_s14), %s2857_s27 }
  0x13   : > { %p2990_p3 = por %p367_p2, %p366_p1  ;;  %p372_p4 = scmp.ne.s32.totalorder %s2837_s22, %s2833_s21 }
  0x14   : > { %p39_p5 = scmp.ge.s32.totalorder %s3475_s14, 2  ;;  %p373_p6 = scmp.eq.s32.totalorder %s2454_s30, 3 }
  0x15   : > { %s3442_s15 = scalar_select %p2990_p3, 1, 0 }
  0x16   : > { %p2457_p7 = scmp.ge.s32.totalorder %s2861_s28, 1  ;;  %p472_p8 = scmp.lt.s32.totalorder %s2861_s28, 5 }
  0x17   : > { %3443 = sst [smem:[#allocation15_spill]] %s3442_s15  ;;  %s3477_s14 = smov (%p39_p5, %s3475_s14), 0 }
  0x18   : > { %3444 = sst [smem:[#allocation16_spill]] %s3477_s14  ;;  %p3000_p9 = por %p373_p6, %p372_p4 }
  0x19   : > { %p473_p10 = pnand %p2457_p7, %p472_p8  ;;  %s353_s17 = ssub.s32 %s2857_s27, %s3477_s14 }
  0x1a   : > { %s3445_s16 = scalar_select %p3000_p9, 1, 0 }
  0x1b   : > { %s356_s18 = sadd.s32 1, %s2841_s23  ;;  %p354_p11 = scmp.eq.s32.totalorder %s353_s17, 0 }
  0x1c   : > { %3446 = sst [smem:[#allocation17_spill]] %s3445_s16  ;;  %476 = sbr.rel (%p473_p10) target bundleno = 2631 (0xa47), region = 68 }
  0x1d   : > { %s3008_s19 = scalar_select %p354_p11, %s2841_s23, %s356_s18  }
  0x1e   : > { %s3415_s20 = sand.u32 (!%p473_p10), 1, %s2837_s22   ;;  %p554_p12 = scmp.lt.s32.totalorder (!%p473_p10), %s2849_s25, 1 }
  0x1f   : > { %3447 = sst [smem:[#allocation18_spill]] %s3008_s19  ;;  %s3014_s29 = sshll.u32 (!%p473_p10), %s3415_s20, 3 }
  0x20   : > { %p558_p13 = scmp.lt.s32.totalorder (!%p473_p10), %s2845_s24, 1  ;;  %s3448_s0 = sld [smem:[#allocation19_spill]] (!%p473_p10) }
  0x21   : > { %s555_s30 = scalar_select %p554_p12, %s2849_s25, 1 }
  0x22   : > { %s3019_s13 = scalar_select %p558_p13, %s2845_s24, 1 }
  0x23   : > { %s2459_s17 = sshll.u32 %s555_s30, 3  ;;  %s3449_s3 = sld [smem:[#allocation20_spill]] }
  0x24   : > { %s2504_s28 = sshll.u32 %s3019_s13, 5  ;;  %s3450_s4 = sld [smem:[#allocation21_spill]] }
  0x25   : > { %s579_s23 = scalar_lea.vmem %s3407_s6, %s3019_s13  ;;  %s598_s21 = scalar_lea.vmem %s3412_s11, %s3019_s13 }
  0x26   : > { %s557_s20 = scalar_lea.vmem %s3448_s0, %s2459_s17  ;;  %s3058_s0 = scalar_lea.vmem %s3409_s8, %s2504_s28 }
  0x27   : > { %s553_s16 = scalar_lea.vmem [#allocation3], %s3014_s29  ;;  %s3451_s19 = sld [smem:[#allocation9_spill]] }
  0x29   : > { %s3036_s22 = scalar_lea.vmem %s3449_s3, %s2504_s28  ;;  %s590_s3 = scalar_lea.vmem %s3410_s9, %s3019_s13 }
  0x2a   : > { %s3041_s24 = scalar_lea.vmem %s3450_s4, %s2504_s28  ;;  %s2507_s4 = sshll.u32 %s3019_s13, 7 }
  0x2b   : > { %s3068_s26 = scalar_lea.vmem %s3411_s10, %s2507_s4 }
  0x2d   : > { %p2468_p0 = scmp.ne.s32.totalorder %s3451_s19, 0 }
  0x2f   : > { %602 = sbr.rel (%p2468_p0) target bundleno = 54 (0x36), region = 72 }
  0x34   : > { %v603_v0 = vld [vmem:[%s557_s20] sm:$0xff]  ;;  %vm604_vm0 = vcmask 261120  }
  0x35   : > { %605 = vst.msk [vmem:[#allocation2] sm:$0xff] %vm604_vm0, %v603_v0 }
  0x36 PF: > { %vm609_vm1 = vcmask 261120   ;;  %v641_v8 = vld [vmem:[%s3036_s22 + $0x18] sm:$0xff]  ;;  %v2863_v9 = vmov 0.0   ;;  %v640_v10 = vld [vmem:[%s3036_s22 + $0x10] sm:$0xff]  ;;  %vm2864_vm2 = vmmov 0   ;;  %v639_v11 = vld [vmem:[%s3036_s22 + $0x8] sm:$0xff]  ;;  %s3452_s19 = scalar_lea.vmem %s3402_s1, %s3019_s13  ;;  %v730_v29 = vlaneseq }
  0x37   : > { %2556 = vmatprep.subr.mxu1 %v2863_v9  ;;  %2564 = vmatprep.mubr.msk.f32.mxu1 %vm2864_vm2, %v2863_v9  ;;  %v638_v12 = vld [vmem:[%s3036_s22] sm:$0xff]  ;;  %s3453_s22 = scalar_lea.vmem %s3403_s2, %s3019_s13  ;;  %s2865_s15 = smov 104   ;;  %v2869_v27 = vmov 1983009808   ;;  %v2870_v32 = vmov 1934713408  }
  0x38   : > { %2557 = vmatpush3.msra.mxu1 %v641_v8  ;;  %2577 = vmatprep.subr.mxu0 %v2863_v9  ;;  %v2469_v17 = vld [vmem:[%s3452_s19] ss:$0 sm:$0xff]  ;;  %s2866_s25 = smov 120   ;;  %s2867_s30 = smov 112   ;;  %v728_v28 = vunpack.c.l.s4 %v2869_v27  ;;  %v731_v31 = vshrl.u32 %v730_v29, 7  ;;  %v760_v33 = vunpack.c.l.s4 %v2870_v32  ;;  %vm1157_vm3 = vcmask 64512  }
  0x39   : > { %2558 = vmatprep.subr.mxu1 %v2863_v9  ;;  %2579 = vmatprep.mubr.msk.f32.mxu0 %vm2864_vm2, %v2863_v9  ;;  %v2470_v19 = vld [vmem:[%s3453_s22] ss:$0 sm:$0xff]  ;;  %s2868_s14 = smov 96   ;;  %s2871_s17 = smov 64   ;;  %vm1947_vm4 = vcmask 130048   ;;  %vm1949_vm5 = vcmask 195584  }
  0x3a   : > { %2559 = vmatpush3.msra.mxu1 %v640_v10  ;;  %v729_v30 = vunpack.c.0.s8 %v728_v28  ;;  %v761_v40 = vunpack.c.0.s8 %v760_v33  ;;  %s2873_s27 = smov 8   ;;  %s2874_s18 = smov 24  }
  0x3b   : > { %2560 = vmatprep.subr.mxu1 %v2863_v9  ;;  %s3454_s19 = scalar_lea.vmem %s3406_s5, %s3019_s13 }
  0x3c   : > { %v3076_v1 = vld [vmem:[#allocation2] sm:$0xff]  ;;  %2561 = vmatpush3.msra.mxu1 %v639_v11  ;;  %v3128_v37 = vsub.s32 %v729_v30, %v731_v31  ;;  %v3138_v46 = vsub.s32 %v761_v40, %v731_v31 }
  0x3d   : > { %v610_v2 = vsel %vm609_vm1, %v3076_v1, 0.0  ;;  %2562 = vmatprep.subr.mxu1 %v2863_v9 }
  0x3e   : > { %611 = vadd.xlane.f32.xlu0 %v610_v2  ;;  %2563 = vmatpush3.msra.mxu1 %v638_v12 }
  0x3f   : > { %2567 = vmatprep.subr.mxu1 %v2863_v9 }
  0xc7   : > { %v612_v3 = vpop.xlane.xlu0 %611 }
  0xc8   : > { %v614_v4 = vmul.f32 0.03125, %v612_v3 }
  0xca   : > { %v615_v5 = vsub.f32 %v3076_v1, %v614_v4 }
  0xcc   : > { %v616_v6 = vmul.f32 %v615_v5, %v615_v5 }
  0xce   : > { %v617_v7 = vsel %vm609_vm1, %v616_v6, 0.0 }
  0xcf   : > { %618 = vadd.xlane.f32.xlu0 %v617_v7 }
 0x158   : > { %v619_v13 = vpop.xlane.xlu0 %618 }
 0x159   : > { %v620_v14 = vmul.f32 0.03125, %v619_v13 }
 0x15b   : > { %v621_v15 = vadd.f32 1e-05, %v620_v14 }
 0x15d   : > { %2747 = vrsqrt.f32 %v621_v15 }
 0x16a   : > { %v2748_v16 = vpop.eup %2747 }
 0x16b   : > { %v623_v18 = vmul.f32 %v2748_v16, %v615_v5 }
 0x16d   : > { %v630_v20 = vmul.f32 %v2469_v17, %v623_v18 }
 0x16f   : > { %v637_v21 = vadd.f32 %v2470_v19, %v630_v20 }
 0x171   : > { %2565 = vmatmul.mubr.msk.f32.vlgmr.msra.gmra.mxu1 %vm609_vm1, %v637_v21 }
 0x172   : > { %2569 = vmatprep.mubr.msk.f32.mxu1 %vm2864_vm2, %v2863_v9 }
 0x231   : > { %v3109_v22 = vpop.f32.mrf.mxu1 }
 0x232   : > { %722 = vrot.lane.b32.xlu0 %v3109_v22, %s2865_s15  ;;  %716 = vrot.lane.b32.xlu1 %v3109_v22, %s2866_s25  ;;  %s3455_s15 = scalar_lea.vmem %s3408_s7, %s3019_s13 }
 0x233   : > { %v2566_v23 = vpop.f32.mrf.mxu1 }
 0x236   : > { %719 = vrot.lane.b32.xlu1 %v3109_v22, %s2867_s30 }
 0x23a   : > { %861 = vrot.lane.b32.xlu1 %v3109_v22, %s2868_s14 }
 0x2a4   : > { %v3115_v24 = vpop.permute.xlu1 %716  ;;  %v3121_v26 = vpop.permute.xlu0 %722 }
 0x2a5   : > { %863 = vrot.lane.b32.xlu1 %v3115_v24, %s2868_s14  ;;  %v741_v38 = vcombine.low %v3115_v24, %v3121_v26  ;;  %v742_v39 = vcombine.high %v3115_v24, %v3121_v26 }
 0x2a7   : > { %v749_v44 = vrot.slane %v741_v38, %v3128_v37  ;;  %v756_v45 = vrot.slane %v742_v39, %v3128_v37 }
 0x2a8   : > { %v3118_v25 = vpop.permute.xlu1 %719 }
 0x2a9   : > { %865 = vrot.lane.b32.xlu1 %v3118_v25, %s2868_s14  ;;  %v725_v34 = vcombine.low %v3109_v22, %v3118_v25  ;;  %v726_v35 = vcombine.high %v3109_v22, %v3118_v25 }
 0x2ab   : > { %v733_v41 = vrot.slane %v725_v34, %v3128_v37  ;;  %v740_v42 = vrot.slane %v726_v35, %v3128_v37 }
 0x2ac   : > { %v862_v36 = vpop.permute.xlu1 %861 }
 0x2ad   : > { %867 = vrot.lane.b32.xlu1 %v3121_v26, %s2868_s14  ;;  %v757_v47 = vcombine.low %v733_v41, %v749_v44  ;;  %v758_v48 = vcombine.high %v733_v41, %v749_v44  ;;  %v773_v49 = vcombine.low %v740_v42, %v756_v45  ;;  %v774_v50 = vcombine.high %v740_v42, %v756_v45 }
 0x2af   : > { %v765_v54 = vrot.slane %v757_v47, %v3138_v46  ;;  %v772_v55 = vrot.slane %v758_v48, %v3138_v46  ;;  %v781_v56 = vrot.slane %v773_v49, %v3138_v46  ;;  %v788_v57 = vrot.slane %v774_v50, %v3138_v46 }
 0x2b1   : > { %v793_v2 = vcombine.low %v765_v54, %v772_v55  ;;  %v2472_v3 = vcombine.high %v765_v54, %v772_v55  ;;  %v809_v4 = vcombine.low %v781_v56, %v788_v57  ;;  %v2473_v5 = vcombine.high %v781_v56, %v788_v57 }
 0x2b3   : > { %v800_v15 = vrot.slane %v793_v2, %v3128_v37  ;;  %v808_v16 = vrot.slane %v2472_v3, %v3128_v37  ;;  %v816_v17 = vrot.slane %v809_v4, %v3128_v37  ;;  %v824_v18 = vrot.slane %v2473_v5, %v3128_v37 }
 0x2b5   : > { %v825_v31 = vcombine.low %v800_v15, %v808_v16  ;;  %v841_v32 = vcombine.low %v816_v17, %v824_v18  ;;  %v826_v33 = vcombine.high %v800_v15, %v808_v16  ;;  %v842_v34 = vcombine.high %v816_v17, %v824_v18 }
 0x2b7   : > { %v833_v44 = vrot.slane %v825_v31, %v3138_v46  ;;  %v849_v45 = vrot.slane %v841_v32, %v3138_v46  ;;  %v840_v47 = vrot.slane %v826_v33, %v3138_v46  ;;  %v856_v48 = vrot.slane %v842_v34, %v3138_v46 }
 0x2b9   : > { %v858_v54 = vcombine.high %v833_v44, %v849_v45  ;;  %v860_v56 = vcombine.high %v840_v47, %v856_v48 }
 0x317   : > { %v864_v43 = vpop.permute.xlu1 %863 }
 0x31b   : > { %v866_v51 = vpop.permute.xlu1 %865 }
 0x31c   : > { %v873_v52 = vcombine.low %v862_v36, %v866_v51  ;;  %v874_v53 = vcombine.high %v862_v36, %v866_v51  ;;  %v857_v51 = vcombine.low %v833_v44, %v849_v45 }
 0x31e   : > { %v881_v61 = vrot.slane %v873_v52, %v3128_v37  ;;  %v888_v62 = vrot.slane %v874_v53, %v3128_v37  ;;  %v859_v52 = vcombine.low %v840_v47, %v856_v48 }
 0x31f   : > { %v868_v58 = vpop.permute.xlu1 %867 }
 0x320   : > { %v889_v59 = vcombine.low %v864_v43, %v868_v58  ;;  %v890_v60 = vcombine.high %v864_v43, %v868_v58 }
 0x322   : > { %v897_v63 = vrot.slane %v889_v59, %v3128_v37  ;;  %v904_v0 = vrot.slane %v890_v60, %v3128_v37 }
 0x324   : > { %v905_v6 = vcombine.low %v881_v61, %v897_v63  ;;  %v906_v7 = vcombine.high %v881_v61, %v897_v63  ;;  %v921_v8 = vcombine.low %v888_v62, %v904_v0  ;;  %v922_v10 = vcombine.high %v888_v62, %v904_v0 }
 0x326   : > { %v913_v11 = vrot.slane %v905_v6, %v3138_v46  ;;  %v920_v12 = vrot.slane %v906_v7, %v3138_v46  ;;  %v929_v13 = vrot.slane %v921_v8, %v3138_v46  ;;  %v936_v14 = vrot.slane %v922_v10, %v3138_v46 }
 0x328   : > { %v941_v19 = vcombine.low %v913_v11, %v920_v12  ;;  %v2474_v20 = vcombine.high %v913_v11, %v920_v12  ;;  %v957_v21 = vcombine.low %v929_v13, %v936_v14  ;;  %v2475_v23 = vcombine.high %v929_v13, %v936_v14 }
 0x32a   : > { %v948_v27 = vrot.slane %v941_v19, %v3128_v37  ;;  %v956_v28 = vrot.slane %v2474_v20, %v3128_v37  ;;  %v964_v29 = vrot.slane %v957_v21, %v3128_v37  ;;  %v972_v30 = vrot.slane %v2475_v23, %v3128_v37 }
 0x32c   : > { %v973_v35 = vcombine.low %v948_v27, %v956_v28  ;;  %v989_v36 = vcombine.low %v964_v29, %v972_v30  ;;  %v974_v38 = vcombine.high %v948_v27, %v956_v28  ;;  %v990_v39 = vcombine.high %v964_v29, %v972_v30 }
 0x32e   : > { %v981_v40 = vrot.slane %v973_v35, %v3138_v46  ;;  %v997_v41 = vrot.slane %v989_v36, %v3138_v46  ;;  %v988_v42 = vrot.slane %v974_v38, %v3138_v46  ;;  %v1004_v43 = vrot.slane %v990_v39, %v3138_v46 }
 0x330   : > { %v1005_v49 = vcombine.low %v981_v40, %v997_v41  ;;  %v1007_v50 = vcombine.low %v988_v42, %v1004_v43  ;;  %v1006_v53 = vcombine.high %v981_v40, %v997_v41  ;;  %v1008_v55 = vcombine.high %v988_v42, %v1004_v43 }
 0x332   : > { %2568 = vmatpush3.xpose.msk.msra.mxu1 %vm1157_vm3, %v1005_v49  ;;  %2578 = vmatpush3.xpose.msk.msra.mxu0 %vm1157_vm3, %v1007_v50 }
 0x333   : > { %2572 = vmatprep.subr.mxu1 %v2863_v9  ;;  %2587 = vmatprep.subr.mxu0 %v2863_v9 }
 0x335   : > { %2570 = vmatmul.mubr.msk.f32.vlgmr.msra.gmra.mxu1 %vm1157_vm3, %v857_v51  ;;  %2580 = vmatmul.mubr.msk.f32.vlgmr.msra.gmra.mxu0 %vm1157_vm3, %v859_v52 }
 0x336   : > { %2573 = vmatpush3.xpose.msk.msra.mxu1 %vm1157_vm3, %v1006_v53  ;;  %2574 = vmatprep.mubr.msk.f32.mxu1 %vm2864_vm2, %v2863_v9 }
 0x337   : > { %2582 = vmatprep.subr.mxu1 %v2863_v9  ;;  %2589 = vmatprep.mubr.msk.f32.mxu0 %vm2864_vm2, %v2863_v9 }
 0x339   : > { %2575 = vmatmul.mubr.msk.f32.vlgmr.msra.gmra.mxu1 %vm1157_vm3, %v858_v54 }
 0x33a   : > { %2583 = vmatpush3.xpose.msk.msra.mxu1 %vm1157_vm3, %v1008_v55  ;;  %2584 = vmatprep.mubr.msk.f32.mxu1 %vm2864_vm2, %v2863_v9 }
 0x33b   : > { %2592 = vmatprep.subr.mxu1 %v2863_v9 }
 0x33d   : > { %2585 = vmatmul.mubr.msk.f32.vlgmr.msra.gmra.mxu1 %vm1157_vm3, %v860_v56 }
 0x33e   : > { %2594 = vmatprep.mubr.msk.f32.mxu1 %vm2864_vm2, %v2863_v9 }
 0x3f5   : > { %v1230_v57 = vpop.f32.mrf.mxu1  ;;  %v1382_v58 = vpop.f32.mrf.mxu0 }
 0x3f6   : > { %v1462_v59 = vsel %vm1157_vm3, %v1230_v57, -inf  ;;  %v1468_v63 = vsel %vm1157_vm3, %v1382_v58, -inf }
 0x3f7   : > { %v2581_v60 = vpop.f32.mrf.mxu0  ;;  %1463 = vmax.xlane.f32.xlu1 %v1462_v59  ;;  %v2571_v61 = vpop.f32.mrf.mxu1 }
 0x3f9   : > { %v1306_v62 = vpop.f32.mrf.mxu1 }
 0x3fa   : > { %v1465_v0 = vsel %vm1157_vm3, %v1306_v62, -inf }
 0x3fb   : > { %1469 = vmax.xlane.f32.xlu1 %v1468_v63  ;;  %1466 = vmax.xlane.f32.xlu0 %v1465_v0  ;;  %v2576_v2 = vpop.f32.mrf.mxu1 }
 0x3fd   : > { %v1458_v3 = vpop.f32.mrf.mxu1 }
 0x3fe   : > { %v1471_v4 = vsel %vm1157_vm3, %v1458_v3, -inf }
 0x3ff   : > { %1472 = vmax.xlane.f32.xlu0 %v1471_v4  ;;  %v2586_v5 = vpop.f32.mrf.mxu1 }
 0x40c   : > { %1009 = vrot.lane.b32.xlu1 %v3109_v22, %s2871_s17 }
 0x480   : > { %v1464_v6 = vpop.xlane.xlu1 %1463 }
 0x481   : > { %v1474_v7 = vsub.f32 %v1230_v57, %v1464_v6 }
 0x483   : > { %v1478_v8 = vmul.f32 1.442695, %v1474_v7 }
 0x484   : > { %v1470_v10 = vpop.xlane.xlu1 %1469  ;;  %v1467_v11 = vpop.xlane.xlu0 %1466 }
 0x485   : > { %2749 = vpow2.f32 %v1478_v8  ;;  %v1476_v12 = vsub.f32 %v1382_v58, %v1470_v10  ;;  %v1475_v13 = vsub.f32 %v1306_v62, %v1467_v11 }
 0x487   : > { %v1482_v14 = vmul.f32 1.442695, %v1476_v12  ;;  %v1480_v15 = vmul.f32 1.442695, %v1475_v13 }
 0x488   : > { %v1473_v16 = vpop.xlane.xlu0 %1472  ;;  %v1010_v30 = vpop.permute.xlu1 %1009 }
 0x489   : > { %2751 = vpow2.f32 %v1482_v14  ;;  %v1477_v17 = vsub.f32 %v1458_v3, %v1473_v16 }
 0x48a   : > { %2753 = vpow2.f32 %v1480_v15 }
 0x48b   : > { %v1484_v18 = vmul.f32 1.442695, %v1477_v17 }
 0x48d   : > { %2755 = vpow2.f32 %v1484_v18 }
 0x492   : > { %v3194_v19 = vpop.eup %2749 }
 0x493   : > { %v1486_v22 = vsel %vm1157_vm3, %v3194_v19, 0.0 }
 0x494   : > { %1487 = vadd.xlane.f32.xlu1 %v1486_v22 }
 0x496   : > { %v3198_v20 = vpop.eup %2751 }
 0x497   : > { %v2754_v21 = vpop.eup %2753  ;;  %v1492_v23 = vsel %vm1157_vm3, %v3198_v20, 0.0 }
 0x498   : > { %1493 = vadd.xlane.f32.xlu1 %v1492_v23  ;;  %v1489_v27 = vsel %vm1157_vm3, %v2754_v21, 0.0 }
 0x499   : > { %1490 = vadd.xlane.f32.xlu0 %v1489_v27 }
 0x49a   : > { %v3203_v28 = vpop.eup %2755 }
 0x49b   : > { %v1495_v29 = vsel %vm1157_vm3, %v3203_v28, 0.0 }
 0x49d   : > { %1496 = vadd.xlane.f32.xlu0 %v1495_v29 }
 0x4a9   : > { %1013 = vrot.lane.b32.xlu1 %v3118_v25, %s2871_s17 }
 0x4ad   : > { %1015 = vrot.lane.b32.xlu1 %v3121_v26, %s2871_s17 }
 0x4b3   : > { %1011 = vrot.lane.b32.xlu0 %v3115_v24, %s2871_s17 }
 0x51d   : > { %v1488_v31 = vpop.xlane.xlu1 %1487 }
 0x51e   : > { %2757 = vrcp.f32 %v1488_v31 }
 0x521   : > { %v1494_v32 = vpop.xlane.xlu1 %1493 }
 0x522   : > { %v1491_v33 = vpop.xlane.xlu0 %1490 }
 0x523   : > { %2759 = vrcp.f32 %v1491_v33 }
 0x524   : > { %2761 = vrcp.f32 %v1494_v32 }
 0x525   : > { %v1014_v34 = vpop.permute.xlu1 %1013 }
 0x526   : > { %v1497_v35 = vpop.xlane.xlu0 %1496  ;;  %v1021_v36 = vcombine.low %v1010_v30, %v1014_v34  ;;  %v1022_v38 = vcombine.high %v1010_v30, %v1014_v34 }
 0x527   : > { %2763 = vrcp.f32 %v1497_v35 }
 0x528   : > { %v1029_v25 = vrot.slane %v1021_v36, %v3128_v37  ;;  %v1036_v26 = vrot.slane %v1022_v38, %v3128_v37 }
 0x529   : > { %v1016_v39 = vpop.permute.xlu1 %1015 }
 0x52a   : > { %v1012_v40 = vpop.permute.xlu0 %1011 }
 0x52b   : > { %v1037_v41 = vcombine.low %v1012_v40, %v1016_v39  ;;  %v1038_v42 = vcombine.high %v1012_v40, %v1016_v39  ;;  %v2758_v2 = vpop.eup %2757 }
 0x52c   : > { %v1502_v12 = vmul.f32 %v2758_v2, %v3194_v19  ;;  %v1954_v19 = vld [vmem:[%s3041_s24 + $0x18] sm:$0xff] }
 0x52d   : > { %v1045_v24 = vrot.slane %v1037_v41, %v3128_v37  ;;  %v1052_v43 = vrot.slane %v1038_v42, %v3128_v37 }
 0x52f   : > { %v1053_v44 = vcombine.low %v1029_v25, %v1045_v24  ;;  %v1054_v45 = vcombine.high %v1029_v25, %v1045_v24  ;;  %v1069_v47 = vcombine.low %v1036_v26, %v1052_v43  ;;  %v1070_v48 = vcombine.high %v1036_v26, %v1052_v43  ;;  %v1953_v26 = vld [vmem:[%s3041_s24 + $0x10] sm:$0xff]  ;;  %v1952_v24 = vld [vmem:[%s3041_s24 + $0x8] sm:$0xff] }
 0x530   : > { %v2760_v3 = vpop.eup %2759 }
 0x531   : > { %v1061_v49 = vrot.slane %v1053_v44, %v3138_v46  ;;  %v1068_v50 = vrot.slane %v1054_v45, %v3138_v46  ;;  %v1077_v51 = vrot.slane %v1069_v47, %v3138_v46  ;;  %v1084_v52 = vrot.slane %v1070_v48, %v3138_v46  ;;  %v2762_v8 = vpop.eup %2761 }
 0x532   : > { %v1503_v13 = vmul.f32 %v2760_v3, %v2754_v21  ;;  %v1504_v17 = vmul.f32 %v2762_v8, %v3198_v20 }
 0x533   : > { %v1089_v53 = vcombine.low %v1061_v49, %v1068_v50  ;;  %v2476_v54 = vcombine.high %v1061_v49, %v1068_v50  ;;  %v1105_v55 = vcombine.low %v1077_v51, %v1084_v52  ;;  %v2477_v56 = vcombine.high %v1077_v51, %v1084_v52  ;;  %v1951_v52 = vld [vmem:[%s3041_s24] sm:$0xff]  ;;  %s2872_s24 = smov 16  }
 0x534   : > { %v2764_v14 = vpop.eup %2763 }
 0x535   : > { %v1096_v57 = vrot.slane %v1089_v53, %v3128_v37  ;;  %v1104_v58 = vrot.slane %v2476_v54, %v3128_v37  ;;  %v1112_v59 = vrot.slane %v1105_v55, %v3128_v37  ;;  %v1120_v60 = vrot.slane %v2477_v56, %v3128_v37 }
 0x536   : > { %v1505_v18 = vmul.f32 %v2764_v14, %v3203_v28 }
 0x537   : > { %v1121_v61 = vcombine.low %v1096_v57, %v1104_v58  ;;  %v1137_v62 = vcombine.low %v1112_v59, %v1120_v60  ;;  %v1122_v63 = vcombine.high %v1096_v57, %v1104_v58  ;;  %v1138_v0 = vcombine.high %v1112_v59, %v1120_v60 }
 0x539   : > { %v1129_v4 = vrot.slane %v1121_v61, %v3138_v46  ;;  %v1145_v5 = vrot.slane %v1137_v62, %v3138_v46  ;;  %v1136_v6 = vrot.slane %v1122_v63, %v3138_v46  ;;  %v1152_v7 = vrot.slane %v1138_v0, %v3138_v46 }
 0x53b   : > { %v1153_v10 = vcombine.low %v1129_v4, %v1145_v5  ;;  %v1154_v11 = vcombine.high %v1129_v4, %v1145_v5  ;;  %v1155_v15 = vcombine.low %v1136_v6, %v1152_v7  ;;  %v1156_v16 = vcombine.high %v1136_v6, %v1152_v7 }
 0x53d   : > { %2588 = vmatpush3.msra.mxu0 %v1153_v10  ;;  %2593 = vmatpush3.msra.mxu1 %v1154_v11  ;;  %v2492_v11 = vld [vmem:[%s3454_s19] ss:$0 sm:$0xff] }
 0x53e   : > { %2590 = vmatmul.mubr.msk.f32.vlgmr.msra.gmra.mxu0 %vm1157_vm3, %v1502_v12  ;;  %2595 = vmatmul.mubr.msk.f32.vlgmr.msra.gmra.mxu1 %vm1157_vm3, %v1503_v13 }
 0x53f   : > { %2597 = vmatprep.subr.mxu0 %v2863_v9  ;;  %2602 = vmatprep.subr.mxu1 %v2863_v9 }
 0x540   : > { %2598 = vmatpush3.msra.mxu0 %v1155_v15  ;;  %2603 = vmatpush3.msra.mxu1 %v1156_v16 }
 0x541   : > { %2599 = vmatprep.mubr.msk.f32.mxu0 %vm2864_vm2, %v2863_v9  ;;  %2604 = vmatprep.mubr.msk.f32.mxu1 %vm2864_vm2, %v2863_v9 }
 0x542   : > { %2600 = vmatmul.mubr.msk.f32.vlgmr.msra.gmra.mxu0 %vm1157_vm3, %v1504_v17  ;;  %2605 = vmatmul.mubr.msk.f32.vlgmr.msra.gmra.mxu1 %vm1157_vm3, %v1505_v18 }
 0x543   : > { %2607 = vmatprep.subr.mxu1 %v2863_v9  ;;  %2615 = vmatprep.mubr.msk.f32.mxu1 %vm2864_vm2, %v2863_v9 }
 0x544   : > { %2629 = vmatprep.subr.mxu0 %v2863_v9  ;;  %2661 = vmatprep.mubr.msk.f32.mxu0 %vm2864_vm2, %v2863_v9 }
 0x545   : > { %2608 = vmatpush3.msra.mxu1 %v1954_v19 }
 0x546   : > { %2609 = vmatprep.subr.mxu1 %v2863_v9 }
 0x547   : > { %2610 = vmatpush3.msra.mxu1 %v1953_v26  ;;  %v2167_v26 = vld [vmem:[%s3068_s26 + $0x48] sm:$0xff] }
 0x548   : > { %2611 = vmatprep.subr.mxu1 %v2863_v9 }
 0x549   : > { %2612 = vmatpush3.msra.mxu1 %v1952_v24  ;;  %v2166_v24 = vld [vmem:[%s3068_s26 + $0x40] sm:$0xff] }
 0x54a   : > { %2613 = vmatprep.subr.mxu1 %v2863_v9 }
 0x54b   : > { %2614 = vmatpush3.msra.mxu1 %v1951_v52  ;;  %v2496_v52 = vld [vmem:[%s590_s3] ss:$0 sm:$0xff]  ;;  %s3456_s3 = sld [smem:[#allocation9_spill]] }
 0x54c   : > { %2618 = vmatprep.subr.mxu1 %v2863_v9 }
 0x551   : > { %p2499_p1 = scmp.ne.s32.totalorder %s3456_s3, 1 }
 0x5fe   : > { %v1575_v22 = vpop.f32.mrf.mxu0  ;;  %v1648_v20 = vpop.f32.mrf.mxu1 }
 0x600   : > { %v2591_v21 = vpop.f32.mrf.mxu0  ;;  %v2596_v23 = vpop.f32.mrf.mxu1 }
 0x601   : > { %v2068_v21 = vld [vmem:[%s3058_s0 + $0x18] sm:$0xff]  ;;  %v2067_v23 = vld [vmem:[%s3058_s0 + $0x10] sm:$0xff] }
 0x602   : > { %v1721_v27 = vpop.f32.mrf.mxu0  ;;  %v1794_v28 = vpop.f32.mrf.mxu1 }
 0x603   : > { %v1798_v29 = vcombine.low %v1575_v22, %v1721_v27  ;;  %v1799_v30 = vcombine.high %v1575_v22, %v1721_v27  ;;  %v1814_v31 = vcombine.low %v1648_v20, %v1794_v28  ;;  %v1815_v32 = vcombine.high %v1648_v20, %v1794_v28  ;;  %v2065_v27 = vld [vmem:[%s3058_s0] sm:$0xff] }
 0x604   : > { %v2601_v33 = vpop.f32.mrf.mxu0  ;;  %v2606_v34 = vpop.f32.mrf.mxu1 }
 0x605   : > { %v1806_v35 = vrot.slane %v1798_v29, %v3128_v37  ;;  %v1813_v36 = vrot.slane %v1799_v30, %v3128_v37  ;;  %v1822_v38 = vrot.slane %v1814_v31, %v3128_v37  ;;  %v1829_v39 = vrot.slane %v1815_v32, %v3128_v37  ;;  %v2494_v32 = vld [vmem:[%s579_s23] ss:$0 sm:$0xff] }
 0x606   : > { %v2495_v34 = vld [vmem:[%s3455_s15] ss:$0 sm:$0xff] }
 0x607   : > { %v1830_v40 = vcombine.low %v1806_v35, %v1822_v38  ;;  %v1831_v41 = vcombine.high %v1806_v35, %v1822_v38  ;;  %v1846_v42 = vcombine.low %v1813_v36, %v1829_v39  ;;  %v1847_v25 = vcombine.high %v1813_v36, %v1829_v39  ;;  %v2173_v38 = vld [vmem:[%s3068_s26 + $0x78] sm:$0xff]  ;;  %v2172_v39 = vld [vmem:[%s3068_s26 + $0x70] sm:$0xff] }
 0x608   : > { %2630 = vmatpush3.msra.mxu0 %v2173_v38 }
 0x609   : > { %v1838_v43 = vrot.slane %v1830_v40, %v3138_v46  ;;  %v1845_v44 = vrot.slane %v1831_v41, %v3138_v46  ;;  %v1854_v45 = vrot.slane %v1846_v42, %v3138_v46  ;;  %v1861_v47 = vrot.slane %v1847_v25, %v3138_v46  ;;  %2631 = vmatprep.subr.mxu0 %v2863_v9  ;;  %v2171_v40 = vld [vmem:[%s3068_s26 + $0x68] sm:$0xff]  ;;  %v2170_v41 = vld [vmem:[%s3068_s26 + $0x60] sm:$0xff]  ;;  %v2169_v42 = vld [vmem:[%s3068_s26 + $0x58] sm:$0xff] }
 0x60a   : > { %2632 = vmatpush3.msra.mxu0 %v2172_v39  ;;  %v2168_v25 = vld [vmem:[%s3068_s26 + $0x50] sm:$0xff] }
 0x60b   : > { %v1866_v48 = vcombine.low %v1838_v43, %v1845_v44  ;;  %v2490_v49 = vcombine.high %v1838_v43, %v1845_v44  ;;  %v1882_v50 = vcombine.low %v1854_v45, %v1861_v47  ;;  %v2491_v51 = vcombine.high %v1854_v45, %v1861_v47  ;;  %2633 = vmatprep.subr.mxu0 %v2863_v9  ;;  %v2165_v43 = vld [vmem:[%s3068_s26 + $0x38] sm:$0xff]  ;;  %v2164_v44 = vld [vmem:[%s3068_s26 + $0x30] sm:$0xff]  ;;  %v2163_v45 = vld [vmem:[%s3068_s26 + $0x28] sm:$0xff] }
 0x60c   : > { %2634 = vmatpush3.msra.mxu0 %v2171_v40  ;;  %v2162_v47 = vld [vmem:[%s3068_s26 + $0x20] sm:$0xff] }
 0x60d   : > { %v1873_v53 = vrot.slane %v1866_v48, %v3128_v37  ;;  %v1881_v54 = vrot.slane %v2490_v49, %v3128_v37  ;;  %v1889_v55 = vrot.slane %v1882_v50, %v3128_v37  ;;  %v1897_v56 = vrot.slane %v2491_v51, %v3128_v37  ;;  %2635 = vmatprep.subr.mxu0 %v2863_v9  ;;  %v2161_v48 = vld [vmem:[%s3068_s26 + $0x18] sm:$0xff]  ;;  %v2160_v49 = vld [vmem:[%s3068_s26 + $0x10] sm:$0xff]  ;;  %v2159_v50 = vld [vmem:[%s3068_s26 + $0x8] sm:$0xff] }
 0x60e   : > { %2636 = vmatpush3.msra.mxu0 %v2170_v41  ;;  %v2158_v51 = vld [vmem:[%s3068_s26] sm:$0xff] }
 0x60f   : > { %v1899_v57 = vcombine.high %v1873_v53, %v1881_v54  ;;  %v1915_v58 = vcombine.high %v1889_v55, %v1897_v56  ;;  %v1898_v59 = vcombine.low %v1873_v53, %v1881_v54  ;;  %v1914_v60 = vcombine.low %v1889_v55, %v1897_v56  ;;  %2637 = vmatprep.subr.mxu0 %v2863_v9 }
 0x610   : > { %2638 = vmatpush3.msra.mxu0 %v2169_v42 }
 0x611   : > { %v1913_v61 = vrot.slane %v1899_v57, %v3138_v46  ;;  %v1929_v62 = vrot.slane %v1915_v58, %v3138_v46  ;;  %v1906_v63 = vrot.slane %v1898_v59, %v3138_v46  ;;  %v1922_v0 = vrot.slane %v1914_v60, %v3138_v46  ;;  %2639 = vmatprep.subr.mxu0 %v2863_v9 }
 0x612   : > { %2640 = vmatpush3.msra.mxu0 %v2168_v25 }
 0x613   : > { %v1932_v2 = vcombine.low %v1913_v61, %v1929_v62  ;;  %v1931_v3 = vcombine.high %v1906_v63, %v1922_v0  ;;  %v1930_v4 = vcombine.low %v1906_v63, %v1922_v0  ;;  %v1933_v37 = vcombine.high %v1913_v61, %v1929_v62  ;;  %2641 = vmatprep.subr.mxu0 %v2863_v9  ;;  %v2498_v0 = vld [vmem:[%s598_s21] ss:$0 sm:$0xff] }
 0x614   : > { %2642 = vmatpush3.msra.mxu0 %v2167_v26 }
 0x615   : > { %1939 = vrot.lane.b32.xlu1 %v1932_v2, %s2872_s24  ;;  %1935 = vrot.lane.b32.xlu0 %v1931_v3, %s2873_s27 }
 0x616   : > { %2643 = vmatprep.subr.mxu0 %v2863_v9 }
 0x617   : > { %2644 = vmatpush3.msra.mxu0 %v2166_v24 }
 0x618   : > { %2645 = vmatprep.subr.mxu0 %v2863_v9 }
 0x619   : > { %1943 = vrot.lane.b32.xlu0 %v1933_v37, %s2874_s18  ;;  %2646 = vmatpush3.msra.mxu0 %v2165_v43 }
 0x61a   : > { %2647 = vmatprep.subr.mxu0 %v2863_v9 }
 0x61b   : > { %2648 = vmatpush3.msra.mxu0 %v2164_v44 }
 0x61c   : > { %2649 = vmatprep.subr.mxu0 %v2863_v9 }
 0x61d   : > { %2650 = vmatpush3.msra.mxu0 %v2163_v45 }
 0x61e   : > { %2651 = vmatprep.subr.mxu0 %v2863_v9 }
 0x61f   : > { %2652 = vmatpush3.msra.mxu0 %v2162_v47 }
 0x620   : > { %2653 = vmatprep.subr.mxu0 %v2863_v9 }
 0x621   : > { %2654 = vmatpush3.msra.mxu0 %v2161_v48 }
 0x622   : > { %2655 = vmatprep.subr.mxu0 %v2863_v9 }
 0x623   : > { %2656 = vmatpush3.msra.mxu0 %v2160_v49 }
 0x624   : > { %2657 = vmatprep.subr.mxu0 %v2863_v9 }
 0x625   : > { %2658 = vmatpush3.msra.mxu0 %v2159_v50 }
 0x626   : > { %2659 = vmatprep.subr.mxu0 %v2863_v9 }
 0x627   : > { %2660 = vmatpush3.msra.mxu0 %v2158_v51 }
 0x687   : > { %v1936_v5 = vpop.permute.xlu0 %1935  ;;  %v1940_v6 = vpop.permute.xlu1 %1939 }
 0x688   : > { %v1946_v7 = vsel %vm1157_vm3, %v1930_v4, %v1936_v5 }
 0x689   : > { %v1948_v10 = vsel %vm1947_vm4, %v1946_v7, %v1940_v6 }
 0x68b   : > { %v1944_v8 = vpop.permute.xlu0 %1943 }
 0x68c   : > { %v1950_v46 = vsel %vm1949_vm5, %v1948_v10, %v1944_v8 }
 0x68d   : > { %2616 = vmatmul.mubr.msk.f32.vlgmr.msra.gmra.mxu1 %vm609_vm1, %v1950_v46 }
 0x68e   : > { %2626 = vmatprep.mubr.msk.f32.mxu1 %vm2864_vm2, %v2863_v9  ;;  %2619 = vmatpush3.msra.mxu1 %v2068_v21 }
 0x68f   : > { %2620 = vmatprep.subr.mxu1 %v2863_v9 }
 0x690   : > { %2621 = vmatpush3.msra.mxu1 %v2067_v23 }
 0x691   : > { %2622 = vmatprep.subr.mxu1 %v2863_v9 }
 0x74d   : > { %v2031_v12 = vpop.f32.mrf.mxu1 }
 0x74e   : > { %v2032_v13 = vadd.f32 %v2492_v11, %v2031_v12 }
 0x74f   : > { %v2617_v14 = vpop.f32.mrf.mxu1 }
 0x750   : > { %v3282_v15 = vadd.f32 %v2032_v13, %v3076_v1  ;;  %v2066_v1 = vld [vmem:[%s3058_s0 + $0x8] sm:$0xff] }
 0x751   : > { %2623 = vmatpush3.msra.mxu1 %v2066_v1 }
 0x752   : > { %v2038_v16 = vsel %vm609_vm1, %v3282_v15, 0.0  ;;  %2624 = vmatprep.subr.mxu1 %v2863_v9 }
 0x753   : > { %2039 = vadd.xlane.f32.xlu1 %v2038_v16  ;;  %2625 = vmatpush3.msra.mxu1 %v2065_v27 }
 0x7dc   : > { %v2040_v17 = vpop.xlane.xlu1 %2039 }
 0x7dd   : > { %v2041_v18 = vmul.f32 0.03125, %v2040_v17 }
 0x7df   : > { %v2042_v19 = vsub.f32 %v3282_v15, %v2041_v18 }
 0x7e1   : > { %v2043_v22 = vmul.f32 %v2042_v19, %v2042_v19 }
 0x7e3   : > { %v2044_v20 = vsel %vm609_vm1, %v2043_v22, 0.0 }
 0x7e4   : > { %2045 = vadd.xlane.f32.xlu0 %v2044_v20 }
 0x86d   : > { %v2046_v28 = vpop.xlane.xlu0 %2045 }
 0x86e   : > { %v2047_v29 = vmul.f32 0.03125, %v2046_v28 }
 0x870   : > { %v2048_v30 = vadd.f32 1e-05, %v2047_v29 }
 0x872   : > { %2765 = vrsqrt.f32 %v2048_v30 }
 0x87f   : > { %v2766_v31 = vpop.eup %2765 }
 0x880   : > { %v2050_v33 = vmul.f32 %v2766_v31, %v2042_v19 }
 0x882   : > { %v2057_v35 = vmul.f32 %v2494_v32, %v2050_v33 }
 0x884   : > { %v2064_v36 = vadd.f32 %v2495_v34, %v2057_v35 }
 0x886   : > { %2627 = vmatmul.mubr.msk.f32.vlgmr.msra.gmra.mxu1 %vm609_vm1, %v2064_v36 }
 0x946   : > { %v2145_v53 = vpop.f32.mrf.mxu1 }
 0x947   : > { %v2146_v54 = vadd.f32 %v2496_v52, %v2145_v53 }
 0x948   : > { %v2628_v55 = vpop.f32.mrf.mxu1 }
 0x949   : > { %v2149_v56 = vmul.f32 %v2146_v54, %v2146_v54 }
 0x94b   : > { %v2150_v57 = vmul.f32 %v2149_v56, %v2146_v54 }
 0x94d   : > { %v2151_v58 = vmul.f32 0.044715, %v2150_v57 }
 0x94f   : > { %v2152_v59 = vadd.f32 %v2151_v58, %v2146_v54 }
 0x951   : > { %v2153_v60 = vmul.f32 0.7978846, %v2152_v59 }
 0x953   : > { %2767 = vtanh.f32 %v2153_v60 }
 0x960   : > { %v2768_v61 = vpop.eup %2767 }
 0x961   : > { %v2155_v62 = vadd.f32 1.0, %v2768_v61 }
 0x963   : > { %v2156_v63 = vmul.f32 0.5, %v2155_v62 }
 0x965   : > { %v2157_v9 = vmul.f32 %v2156_v63, %v2146_v54 }
 0x967   : > { %2662 = vmatmul.mubr.f32.vlgmr.msra.gmra.mxu0 %v2157_v9 }
 0xa27   : > { %v2247_v2 = vpop.f32.mrf.mxu0 }
 0xa28   : > { %v2248_v3 = vadd.f32 %v2498_v0, %v2247_v2  ;;  %2256 = sbr.rel (%p2499_p1) target bundleno = 2606 (0xa2e), region = 76 }
 0xa29   : > { %v2663_v4 = vpop.f32.mrf.mxu0 }
 0xa2a   : > { %v2251_v37 = vadd.f32 %v2248_v3, %v3282_v15 }
 0xa2c   : > { %2252 = vst.msk [vmem:[#allocation2] sm:$0xff] %vm609_vm1, %v2251_v37 }
 0xa2d   : > { %2257 = vst.msk [vmem:[%s553_s16] sm:$0xff] %vm609_vm1, %v2251_v37 }
 0xa2e PF: > { %s3457_s14 = sld [smem:[#allocation10_spill]]  ;;  %s2272_s28 = sshll.u32 %s553_s16, 4  ;;  %s2273_s28 = int_to_ptr.vmem [resolvable:$true] %s2272_s28 }
 0xa2f   : > { %s3458_s17 = sld [smem:[#allocation7_spill]]  ;;  %s2769_s12 = scalar_lea.vmem %s2273_s28, 128 }
 0xa30   : > { %s3460_s18 = sld [smem:[#allocation22_spill]]  ;;  %p2770_p2 = scmp.ne.s32.totalorder %s2273_s28, %s2769_s12 }
 0xa31   : > { %s2875_s22 = smov [#allocation3]  }
 0xa32   : > { %p2771_p4 = pnand %p2770_p2, %p2990_p3  ;;  %s2773_s0 = sshll.u32 %s2875_s22, 4  ;;  %s2774_s0 = int_to_ptr.vmem [resolvable:$false] %s2773_s0 }
 0xa33   : > { %s2775_s15 = scalar_lea.vmem %s2774_s0, 256  ;;  %p2776_p6 = scmp.lt.s32.totalorder %s2273_s28, %s2774_s0 }
 0xa34   : > { %s2501_s21 = sshll.u32 %s3457_s14, 7  ;;  %p2772_p5 = pneg %p2771_p4 }
 0xa35   : > { %s3461_s19 = sand.u32 1, %s3458_s17   ;;  %p2777_p7 = scmp.lt.s32.totalorder %s2775_s15, %s2769_s12 }
 0xa36   : > { %s2270_s4 = scalar_lea.hbm %s3460_s18, %s2501_s21  ;;  %s2259_s20 = scalar_lea.sflag [#allocation4], %s3461_s19 }
 0xa37   : > { %p2778_p8 = por %p2777_p7, %p2776_p6 }
 0xa39   : > { %p2779_p10 = pnand %p2778_p8, %p2772_p5 }
 0xa3b   : > { %2782 = shalt.err (!%p2779_p10)
}
 0xa3c   : > { %s2783_s23 = scalar_lea.hbm %s2270_s4, 128  ;;  %s2787_s25 = scalar_lea.hbm %s3460_s18, 256 }
 0xa3d   : > { %p2784_p11 = scmp.ne.s32.totalorder %s2270_s4, %s2783_s23  ;;  %p2788_p0 = scmp.lt.s32.totalorder %s2270_s4, %s3460_s18 }
 0xa3e   : > { %p2789_p1 = scmp.lt.s32.totalorder %s2787_s25, %s2783_s23 }
 0xa3f   : > { %p2785_p12 = pnand %p2784_p11, %p2990_p3 }
 0xa40   : > { %p2790_p2 = por %p2789_p1, %p2788_p0 }
 0xa41   : > { %p2786_p13 = pneg %p2785_p12 }
 0xa43   : > { %p2791_p4 = pnand %p2790_p2, %p2786_p13 }
 0xa45   : > { %2794 = shalt.err (!%p2791_p4)
}
 0xa46   : > { %2664 = dma.vmem_to_hbm [thread:$0]  (%p2990_p3), %s2273_s28, 128, %s2270_s4, %s2259_s20  }
 0xa47 PF: > { %s3462_s3 = sld [smem:[#allocation13_spill]] }
 0xa48   : > { %s3463_s14 = sld [smem:[#allocation6_spill]] }
 0xa4d   : > { %p2670_p5 = scmp.ge.s32.totalorder %s3462_s3, 2 }
 0xa4e   : > { %s2284_s21 = sand.u32 1, %s3463_s14  }
 0xa4f   : > { %p2667_p6 = pnand %p2670_p5, %p3000_p9  ;;  %s2285_s24 = scalar_lea.sflag [#allocation4], %s2284_s21 }
 0xa51   : > { %p2668_p7 = pneg %p2667_p6 }
 0xa53   : > { %2828 = dma.done.wait (%p2668_p7), %s2285_s24, 128  }
 0xa54   : > { %2830 = vsyncadd (%p2668_p7), %s2285_s24, 4294967168  ;;  %s25_s28 = sadd.s32 1, %s3462_s3   ;;  %s3465_s21 = sld [smem:[#allocation7_spill]] }
 0xa55   : > { %p22_p8 = scmp.ge.s32.totalorder %s25_s28, 6   ;;  %s3466_s22 = sld [smem:[#allocation8_spill]] }
 0xa56   : > { %s3467_s23 = sld [smem:[#allocation18_spill]] }
 0xa57   : > { %s3468_s24 = sld [smem:[#allocation11_spill]]  ;;  %24 = sbr.rel (!%p22_p8) target bundleno = 10 (0xa), region = 144 }
 0xa58   : > { %s3469_s25 = sld [smem:[#allocation12_spill]] }
 0xa59   : > { %s3470_s26 = sld [smem:[#allocation14_spill]] }
 0xa5a   : > { %s3471_s27 = sld [smem:[#allocation16_spill]] }
 0xa5c   :  { %2290 = vsyncpa [#allocation4], 1 }
 0xa5d   :  { %2292 = vsyncpa [#allocation4 + $0x1], 1 }

</bundles_post_ra>
